<compile_context>
chip_gen: v6e
topology: v6e:2x2x1
jax: 0.10.0
libtpu: 0.0.40
codegen_flags: <defaults>
</compile_context>

<pallas_src>
import jax
import jax.numpy as jnp
from jax import lax
from jax.experimental import pallas as pl
from jax.experimental.pallas import tpu as pltpu


# ---------------------------------------------------------------------------
# Shared per-tile math (used by both kernels).
# ---------------------------------------------------------------------------
def _tile_compute(ue, ie, w1u, w1i, consts, bp, emb_dim):
    """ue, ie: (TB, 2D) fused [mf | mlp] rows.  Returns (1, TB) predictions."""
    D = emb_dim
    # MF branch: elementwise product (VPU), f32.
    mf = ue[:, :D].astype(jnp.float32) * ie[:, :D].astype(jnp.float32)
    # MLP branch, concat-free: Linear(2D, D) as two K=D matmuls (MXU, f32 acc).
    h = jnp.dot(ue[:, D:], w1u, preferred_element_type=jnp.float32)
    h = h + jnp.dot(ie[:, D:], w1i, preferred_element_type=jnp.float32)
    h = jnp.maximum(h + consts[0:1, :], 0.0)               # b1 + ReLU
    # Prediction head, concat-free: VPU multiply + lane (XLU) reduction.
    z = mf * consts[1:2, :] + h * consts[2:3, :]            # wp_mf / wp_mlp rows
    pred = jnp.sum(z, axis=-1) + bp                         # (TB,)
    return pred.reshape(1, -1)                              # lane-dense (1, TB)


# ---------------------------------------------------------------------------
# Path A: small D -- gather done by XLA, kernel streams (TB, 2D) tiles.
# ---------------------------------------------------------------------------
def _neumf_tile_kernel(ue_ref, ie_ref, w1u_ref, w1i_ref, consts_ref, bp_ref,
                       out_ref):
    D = w1u_ref.shape[0]
    out_ref[...] = _tile_compute(ue_ref[...], ie_ref[...],
                                 w1u_ref[...], w1i_ref[...],
                                 consts_ref[...], bp_ref[0], D)


# ---------------------------------------------------------------------------
# Path B: D >= 128 -- in-kernel gather with scalar-prefetched ids and
# double-buffered per-row DMAs from the HBM-resident fused tables.
# ---------------------------------------------------------------------------
def _neumf_gather_kernel(uidx_ref, pidx_ref,          # scalar prefetch (SMEM)
                         user_tbl, item_tbl,          # fused tables in HBM (ANY)
                         w1u_ref, w1i_ref, consts_ref, bp_ref,
                         out_ref,
                         ubuf, ibuf, sem):
    TB = ubuf.shape[1]
    D = w1u_ref.shape[0]
    t = pl.program_id(0)
    nt = pl.num_programs(0)

    def row_copies(tile, slot, r):
        base = tile * TB
        u = uidx_ref[base + r]
        p = pidx_ref[base + r]
        cu = pltpu.make_async_copy(user_tbl.at[u], ubuf.at[slot, r], sem.at[slot])
        ci = pltpu.make_async_copy(item_tbl.at[p], ibuf.at[slot, r], sem.at[slot])
        return cu, ci

    def fetch_tile(tile, slot):
        def body(r, carry):
            cu, ci = row_copies(tile, slot, r)
            cu.start()
            ci.start()
            return carry
        lax.fori_loop(0, TB, body, 0)

    def wait_tile(tile, slot):
        def body(r, carry):
            cu, ci = row_copies(tile, slot, r)
            cu.wait()
            ci.wait()
            return carry
        lax.fori_loop(0, TB, body, 0)

    # Prime slot 0 on the first grid step.
    @pl.when(t == 0)
    def _():
        fetch_tile(0, 0)

    # Kick off the next tile's row DMAs before blocking on the current tile so
    # they are in flight while we wait + compute.
    @pl.when(t + 1 < nt)
    def _():
        fetch_tile(t + 1, (t + 1) % 2)

    slot = t % 2
    wait_tile(t, slot)

    out_ref[...] = _tile_compute(ubuf[slot], ibuf[slot],
                                 w1u_ref[...], w1i_ref[...],
                                 consts_ref[...], bp_ref[0], D)


# ---------------------------------------------------------------------------
# Wrapper.
# ---------------------------------------------------------------------------
def _round_up(x, m):
    return ((x + m - 1) // m) * m


def _pick_batch_tile(batch, emb_dim):
    """TB: multiple of 128 (lane-dense (1, TB) output blocks), ~2 MiB of fused
    embedding bytes per tile, clamped to [128, 1024], and capped near
    ceil(B/2) so the grid has >= 2 steps when the batch allows (v7x: 2 TCs)."""
    target = max(128, (2 * 1024 * 1024) // (8 * emb_dim))   # TB * 2D * 4 ~ 2 MiB
    tb = min(1024, _round_up(target, 128))
    tb = min(tb, max(128, _round_up((batch + 1) // 2, 128)))
    return tb


def _vmem_limit_bytes():
    """~75% of physical VMEM, capped at 96 MiB (=> ~48 MiB on v7x's 64 MiB,
    96 MiB on v5e/v6e's 128 MiB)."""
    try:
        cap = pltpu.get_tpu_info().vmem_capacity_bytes
    except Exception:
        cap = 64 * 1024 * 1024
    return int(min(cap * 3 // 4, 96 * 1024 * 1024))


def fuse_params(params, table_dtype=jnp.float32):
    """One-time parameter repack for the kernels:
       * MF + MLP tables fused along features -> one gather per id,
       * w1 pre-split into its user/item halves (concat-free MLP matmul),
       * b1 / wp halves merged into one resident (8, D) constant block,
       * bp kept as a (1,) SMEM scalar."""
    D = params["user_mf"].shape[1]
    consts = jnp.zeros((8, D), jnp.float32)
    consts = consts.at[0].set(params["b1"])
    consts = consts.at[1].set(params["wp"][:D, 0])
    consts = consts.at[2].set(params["wp"][D:, 0])
    return {
        "emb_dim": D,
        "user_table": jnp.concatenate(
            [params["user_mf"], params["user_mlp"]], axis=-1).astype(table_dtype),
        "item_table": jnp.concatenate(
            [params["item_mf"], params["item_mlp"]], axis=-1).astype(table_dtype),
        "w1u": params["w1"][:D, :],
        "w1i": params["w1"][D:, :],
        "consts": consts,
        "bp": params["bp"].reshape(1).astype(jnp.float32),
    }


def neumf_forward(fused, user_idx, pos_idx, *, use_in_kernel_gather=None):
    """NeuMF_Encoder.forward (eval-mode dropout).  Returns float32 (B,)."""
    D = fused["emb_dim"]
    user_table, item_table = fused["user_table"], fused["item_table"]
    w1u, w1i, consts, bp = fused["w1u"], fused["w1i"], fused["consts"], fused["bp"]

    B = user_idx.shape[0]
    TB = _pick_batch_tile(B, D)
    num_tiles = -(-B // TB)
    B_pad = num_tiles * TB

    # Pad ids with 0 (a valid row) so padded rows compute finite values that
    # are sliced away below -- no NaNs from uninitialized tiles.
    uidx = jnp.pad(user_idx.astype(jnp.int32), (0, B_pad - B))
    pidx = jnp.pad(pos_idx.astype(jnp.int32), (0, B_pad - B))

    if use_in_kernel_gather is None:
        # Per-row DMAs are only worthwhile once a fused row is >= ~1 KiB.
        use_in_kernel_gather = D >= 128

    resident = lambda shape: pl.BlockSpec(shape, lambda i, *_: (0, 0))
    smem_spec = pl.BlockSpec(memory_space=pltpu.MemorySpace.SMEM)
    out_spec = pl.BlockSpec((1, TB), lambda i, *_: (0, i))
    out_shape = jax.ShapeDtypeStruct((1, B_pad), jnp.float32)
    vmem_limit = _vmem_limit_bytes()

    if use_in_kernel_gather:
        # "arbitrary": the double-buffered scratch carries state across grid
        # steps, so execution must stay sequential; the kernel is HBM-bound so
        # v7x dual-core sharding would not add bandwidth anyway.
        grid_spec = pltpu.PrefetchScalarGridSpec(
            num_scalar_prefetch=2,
            grid=(num_tiles,),
            in_specs=[
                pl.BlockSpec(memory_space=pl.ANY),     # user_table (HBM)
                pl.BlockSpec(memory_space=pl.ANY),     # item_table (HBM)
                resident((D, D)),                      # w1 user half
                resident((D, D)),                      # w1 item half
                resident((8, D)),                      # b1 / wp_mf / wp_mlp
                smem_spec,                             # bp scalar
            ],
            out_specs=out_spec,
            scratch_shapes=[
                pltpu.VMEM((2, TB, 2 * D), user_table.dtype),
                pltpu.VMEM((2, TB, 2 * D), item_table.dtype),
                pltpu.SemaphoreType.DMA((2,)),
            ],
        )
        out = pl.pallas_call(
            _neumf_gather_kernel,
            out_shape=out_shape,
            grid_spec=grid_spec,
            compiler_params=pltpu.CompilerParams(
                dimension_semantics=("arbitrary",),
                vmem_limit_bytes=vmem_limit,
            ),
        )(uidx, pidx, user_table, item_table, w1u, w1i, consts, bp)
    else:
        # Small D: let XLA gather the fused tables once per id, then stream
        # (TB, 2D) tiles through the standard double-buffered BlockSpec pipeline.
        ue = jnp.take(user_table, uidx, axis=0)
        ie = jnp.take(item_table, pidx, axis=0)
        out = pl.pallas_call(
            _neumf_tile_kernel,
            out_shape=out_shape,
            grid=(num_tiles,),
            in_specs=[
                pl.BlockSpec((TB, 2 * D), lambda i: (i, 0)),
                pl.BlockSpec((TB, 2 * D), lambda i: (i, 0)),
                resident((D, D)),
                resident((D, D)),
                resident((8, D)),
                smem_spec,
            ],
            out_specs=out_spec,
            compiler_params=pltpu.CompilerParams(
                dimension_semantics=("parallel",),
                vmem_limit_bytes=vmem_limit,
            ),
        )(ue, ie, w1u, w1i, consts, bp)

    return out[0, :B]


# ---------------------------------------------------------------------------
# Parameter init + pure-JAX reference (matches the PyTorch module, eval mode).
# ---------------------------------------------------------------------------
def xavier_uniform(key, shape, dtype=jnp.float32):
    fan_in, fan_out = shape[0], shape[1]
    limit = jnp.sqrt(6.0 / (fan_in + fan_out)).astype(dtype)
    return jax.random.uniform(key, shape, dtype, minval=-limit, maxval=limit)


def init_params(key, user_num, item_num, emb_size):
    ks = jax.random.split(key, 8)
    D = emb_size
    params = {
        "user_mf":  xavier_uniform(ks[0], (user_num, D)),
        "item_mf":  xavier_uniform(ks[1], (item_num, D)),
        "user_mlp": xavier_uniform(ks[2], (user_num, D)),
        "item_mlp": xavier_uniform(ks[3], (item_num, D)),
    }
    lim1 = 1.0 / jnp.sqrt(2.0 * D)          # nn.Linear default: U(-1/sqrt(fan_in), .)
    params["w1"] = jax.random.uniform(ks[4], (2 * D, D), jnp.float32, -lim1, lim1)
    params["b1"] = jax.random.uniform(ks[5], (D,), jnp.float32, -lim1, lim1)
    limp = 1.0 / jnp.sqrt(2.0 * D)
    params["wp"] = jax.random.uniform(ks[6], (2 * D, 1), jnp.float32, -limp, limp)
    params["bp"] = jax.random.uniform(ks[7], (1,), jnp.float32, -limp, limp)
    return params


def reference_forward(params, user_idx, pos_idx):
    u_mf = params["user_mf"][user_idx]
    i_mf = params["item_mf"][pos_idx]
    u_mlp = params["user_mlp"][user_idx]
    i_mlp = params["item_mlp"][pos_idx]
    mf = u_mf * i_mf
    x = jnp.concatenate([u_mlp, i_mlp], axis=-1)
    h = jnp.maximum(x @ params["w1"] + params["b1"], 0.0)
    z = jnp.concatenate([mf, h], axis=-1)
    return (z @ params["wp"] + params["bp"])[:, 0]


def _run_case(name, key, user_num, item_num, emb_size, batch, use_in_kernel_gather):
    pkey, ukey, ikey = jax.random.split(key, 3)
    params = init_params(pkey, user_num, item_num, emb_size)
    user_idx = jax.random.randint(ukey, (batch,), 0, user_num, dtype=jnp.int32)
    pos_idx = jax.random.randint(ikey, (batch,), 0, item_num, dtype=jnp.int32)

    fused = fuse_params(params)
    out = neumf_forward(fused, user_idx, pos_idx,
                        use_in_kernel_gather=use_in_kernel_gather)
    out = jax.block_until_ready(out)

    ref = reference_forward(params, user_idx, pos_idx)
    assert out.shape == (batch,), (name, out.shape)
    assert bool(jnp.all(jnp.isfinite(out))), name
    assert jnp.allclose(out, ref, atol=1e-4, rtol=1e-4), (name, out, ref)


if __name__ == "__main__":
    key = jax.random.PRNGKey(0)
    k1, k2 = jax.random.split(key)

    # Small-D case: fused-table gather stays in XLA, BlockSpec-pipelined kernel.
    _run_case("small_d", k1, user_num=16, item_num=24, emb_size=32, batch=8,
              use_in_kernel_gather=False)

    # D = 128 case spanning 2 batch tiles: in-kernel DMA-gather path
    # (scalar-prefetched ids + double-buffered per-row async copies).
    _run_case("in_kernel_gather", k2, user_num=64, item_num=80, emb_size=128,
              batch=160, use_in_kernel_gather=True)

    print("KERNEL_OK")
</pallas_src>

<mosaic_0001>
module attributes {stable_mosaic.version = 11 : i64} {
  func.func @_neumf_tile_kernel(%arg0: i32, %arg1: memref<128x64xf32, #tpu.memory_space<vmem>>, %arg2: memref<128x64xf32, #tpu.memory_space<vmem>>, %arg3: memref<32x32xf32, #tpu.memory_space<vmem>>, %arg4: memref<32x32xf32, #tpu.memory_space<vmem>>, %arg5: memref<8x32xf32, #tpu.memory_space<vmem>>, %arg6: memref<1xf32, #tpu.memory_space<smem>>, %arg7: memref<1x128xf32, #tpu.memory_space<vmem>>) attributes {dimension_semantics = [#tpu.dimension_semantics<parallel>], iteration_bounds = array<i64: 1>, scalar_prefetch = 0 : i64, scratch_operands = 0 : i64, tpu.core_type = #tpu.core_type<tc>, window_params = [{transform_indices = @transform_0, window_bounds = array<i64: 128, 64>}, {transform_indices = @transform_1, window_bounds = array<i64: 128, 64>}, {pipeline_mode = #tpu.pipeline_mode<synchronous>, transform_indices = @transform_2, window_bounds = array<i64: 32, 32>}, {pipeline_mode = #tpu.pipeline_mode<synchronous>, transform_indices = @transform_3, window_bounds = array<i64: 32, 32>}, {pipeline_mode = #tpu.pipeline_mode<synchronous>, transform_indices = @transform_4, window_bounds = array<i64: 8, 32>}, {transform_indices = @transform_5, window_bounds = array<i64: 1>}, {transform_indices = @transform_6, window_bounds = array<i64: 1, 128>}]} {
    %c0 = arith.constant 0 : index
    %c0_0 = arith.constant 0 : index
    %0 = vector.load %arg1[%c0, %c0_0] : memref<128x64xf32, #tpu.memory_space<vmem>>, vector<128x64xf32>
    %c0_1 = arith.constant 0 : index
    %c0_2 = arith.constant 0 : index
    %1 = vector.load %arg2[%c0_1, %c0_2] : memref<128x64xf32, #tpu.memory_space<vmem>>, vector<128x64xf32>
    %c0_3 = arith.constant 0 : index
    %c0_4 = arith.constant 0 : index
    %2 = vector.load %arg3[%c0_3, %c0_4] : memref<32x32xf32, #tpu.memory_space<vmem>>, vector<32x32xf32>
    %c0_5 = arith.constant 0 : index
    %c0_6 = arith.constant 0 : index
    %3 = vector.load %arg4[%c0_5, %c0_6] : memref<32x32xf32, #tpu.memory_space<vmem>>, vector<32x32xf32>
    %c0_7 = arith.constant 0 : index
    %c0_8 = arith.constant 0 : index
    %4 = vector.load %arg5[%c0_7, %c0_8] : memref<8x32xf32, #tpu.memory_space<vmem>>, vector<8x32xf32>
    %c0_9 = arith.constant 0 : index
    %5 = memref.load %arg6[%c0_9] : memref<1xf32, #tpu.memory_space<smem>>
    %6 = vector.extract_strided_slice %0 {offsets = [0, 0], sizes = [128, 32], strides = [1, 1]} : vector<128x64xf32> to vector<128x32xf32>
    %7 = vector.extract_strided_slice %1 {offsets = [0, 0], sizes = [128, 32], strides = [1, 1]} : vector<128x64xf32> to vector<128x32xf32>
    %8 = arith.mulf %6, %7 : vector<128x32xf32>
    %9 = vector.extract_strided_slice %0 {offsets = [0, 32], sizes = [128, 32], strides = [1, 1]} : vector<128x64xf32> to vector<128x32xf32>
    %cst = arith.constant dense<0.000000e+00> : vector<128x32xf32>
    %10 = tpu.matmul %9, %2, %cst {dimension_numbers = #tpu.dot_dimension_numbers<[1], [0], [0], [1], [0, 0, 1, 1], [], []>} : vector<128x32xf32>, vector<32x32xf32>, vector<128x32xf32> -> vector<128x32xf32>
    %11 = vector.extract_strided_slice %1 {offsets = [0, 32], sizes = [128, 32], strides = [1, 1]} : vector<128x64xf32> to vector<128x32xf32>
    %cst_10 = arith.constant dense<0.000000e+00> : vector<128x32xf32>
    %12 = tpu.matmul %11, %3, %cst_10 {dimension_numbers = #tpu.dot_dimension_numbers<[1], [0], [0], [1], [0, 0, 1, 1], [], []>} : vector<128x32xf32>, vector<32x32xf32>, vector<128x32xf32> -> vector<128x32xf32>
    %13 = arith.addf %10, %12 : vector<128x32xf32>
    %14 = vector.extract_strided_slice %4 {offsets = [0, 0], sizes = [1, 32], strides = [1, 1]} : vector<8x32xf32> to vector<1x32xf32>
    %15 = vector.broadcast %14 : vector<1x32xf32> to vector<128x32xf32>
    %16 = arith.addf %13, %15 : vector<128x32xf32>
    %cst_11 = arith.constant 0.000000e+00 : f32
    %17 = vector.broadcast %cst_11 : f32 to vector<128x32xf32>
    %18 = arith.maximumf %16, %17 : vector<128x32xf32>
    %19 = vector.extract_strided_slice %4 {offsets = [1, 0], sizes = [1, 32], strides = [1, 1]} : vector<8x32xf32> to vector<1x32xf32>
    %20 = vector.broadcast %19 : vector<1x32xf32> to vector<128x32xf32>
    %21 = arith.mulf %8, %20 : vector<128x32xf32>
    %22 = vector.extract_strided_slice %4 {offsets = [2, 0], sizes = [1, 32], strides = [1, 1]} : vector<8x32xf32> to vector<1x32xf32>
    %23 = vector.broadcast %22 : vector<1x32xf32> to vector<128x32xf32>
    %24 = arith.mulf %18, %23 : vector<128x32xf32>
    %25 = arith.addf %21, %24 : vector<128x32xf32>
    %cst_12 = arith.constant dense<0.000000e+00> : vector<128xf32>
    %26 = vector.multi_reduction <add>, %25, %cst_12 [1] : vector<128x32xf32> to vector<128xf32>
    %27 = vector.broadcast %5 : f32 to vector<128xf32>
    %28 = arith.addf %26, %27 : vector<128xf32>
    %29 = vector.shape_cast %28 : vector<128xf32> to vector<1x128xf32>
    %c0_13 = arith.constant 0 : index
    %c0_14 = arith.constant 0 : index
    %30 = vector.load %arg7[%c0_13, %c0_14] : memref<1x128xf32, #tpu.memory_space<vmem>>, vector<1x128xf32>
    tpu.vector_store %arg7[%c0_13, %c0_14], %29 {strides = array<i32>} : memref<1x128xf32, #tpu.memory_space<vmem>>, vector<1x128xf32>,
    return
  }
  func.func @transform_0(%arg0: i32) -> (i32, i32) {
    %c0_i32 = arith.constant 0 : i32
    %c0_i32_0 = arith.constant 0 : i32
    return %arg0, %c0_i32 : i32, i32
  }
  func.func @transform_1(%arg0: i32) -> (i32, i32) {
    %c0_i32 = arith.constant 0 : i32
    %c0_i32_0 = arith.constant 0 : i32
    return %arg0, %c0_i32 : i32, i32
  }
  func.func @transform_2(%arg0: i32) -> (i32, i32) {
    %c0_i32 = arith.constant 0 : i32
    %c0_i32_0 = arith.constant 0 : i32
    %c0_i32_1 = arith.constant 0 : i32
    return %c0_i32, %c0_i32_0 : i32, i32
  }
  func.func @transform_3(%arg0: i32) -> (i32, i32) {
    %c0_i32 = arith.constant 0 : i32
    %c0_i32_0 = arith.constant 0 : i32
    %c0_i32_1 = arith.constant 0 : i32
    return %c0_i32, %c0_i32_0 : i32, i32
  }
  func.func @transform_4(%arg0: i32) -> (i32, i32) {
    %c0_i32 = arith.constant 0 : i32
    %c0_i32_0 = arith.constant 0 : i32
    %c0_i32_1 = arith.constant 0 : i32
    return %c0_i32, %c0_i32_0 : i32, i32
  }
  func.func @transform_5(%arg0: i32) -> i32 {
    %c0_i32 = arith.constant 0 : i32
    %c0_i32_0 = arith.constant 0 : i32
    return %c0_i32 : i32
  }
  func.func @transform_6(%arg0: i32) -> (i32, i32) {
    %c0_i32 = arith.constant 0 : i32
    %c0_i32_0 = arith.constant 0 : i32
    return %c0_i32, %arg0 : i32, i32
  }
}

</mosaic_0001>

<bundles_post_ra>
// kernel: tpu_custom_call.1
= control target key start
LH: loop header
LB: loop body
LE: loop exit
PB: predicated region body
PF: predicated region fallthrough
CT: control target
= control target key end

     0   :  { %s994_s25 = smov 96   ;;  %s1409_s0 = inlined_call_operand.vmem [shape: f32[128,64], index: 0, kind: input, shape index: {}]   ;;  %s1410_s1 = inlined_call_operand.vmem [shape: f32[128,64], index: 1, kind: input, shape index: {}]   ;;  %s1411_s2 = inlined_call_operand.vmem [shape: f32[32,32], index: 2, kind: input, shape index: {}]   ;;  %s1412_s3 = inlined_call_operand.vmem [shape: f32[32,32], index: 3, kind: input, shape index: {}]   ;;  %s1413_s4 = inlined_call_operand.vmem [shape: f32[8,32], index: 4, kind: input, shape index: {}]   ;;  %s1414_s5 = inlined_call_operand.<no memory space> [shape: f32[1], index: 5, kind: input, shape index: {}]   ;;  %s1415_s6 = inlined_call_operand.hbm [shape: f32[1,128], index: 6, kind: output, shape index: {}]  }
   0x1   :  { %v42_v0 = vld [vmem:[%s1410_s1 + $0x8] sm:$0xff]  ;;  %v41_v3 = vld [vmem:[%s1410_s1] sm:$0xff]  ;;  %v27_v5 = vld [vmem:[%s1409_s0 + $0x10] sm:$0xff] }
   0x2   :  { %v26_v1 = vld [vmem:[%s1409_s0 + $0x8] sm:$0xff]  ;;  %101 = vrot.lane.b32.xlu1 %v42_v0, %s994_s25  ;;  %v25_v4 = vld [vmem:[%s1409_s0] sm:$0xff]  ;;  %99 = vrot.lane.b32.xlu0 %v41_v3, %s994_s25 }
   0x3   :  { %v1038_v2 = vmul.f32 %v42_v0, %v26_v1  ;;  %v1050_v6 = vmul.f32 %v41_v3, %v25_v4  ;;  %v43_v7 = vld [vmem:[%s1410_s1 + $0x10] sm:$0xff]  ;;  %v28_v8 = vld [vmem:[%s1409_s0 + $0x18] sm:$0xff]  ;;  %v29_v12 = vld [vmem:[%s1409_s0 + $0x20] sm:$0xff] }
   0x4   :  { %v44_v9 = vld [vmem:[%s1410_s1 + $0x18] sm:$0xff]  ;;  %v1061_v10 = vmul.f32 %v43_v7, %v27_v5  ;;  %v45_v13 = vld [vmem:[%s1410_s1 + $0x20] sm:$0xff]  ;;  %v30_v14 = vld [vmem:[%s1409_s0 + $0x28] sm:$0xff] }
   0x5   :  { %v1063_v11 = vmul.f32 %v44_v9, %v28_v8  ;;  %v1074_v15 = vmul.f32 %v45_v13, %v29_v12  ;;  %v46_v16 = vld [vmem:[%s1410_s1 + $0x28] sm:$0xff]  ;;  %v1082_v17 = vld [vmem:[%s1409_s0 + $0x30] sm:$0xff]  ;;  %v32_v21 = vld [vmem:[%s1409_s0 + $0x38] sm:$0xff] }
   0x6   :  { %v1087_v18 = vld [vmem:[%s1410_s1 + $0x30] sm:$0xff]  ;;  %327 = vrot.lane.b32.xlu1 %v26_v1, %s994_s25  ;;  %v1090_v19 = vmul.f32 %v46_v16, %v30_v14  ;;  %v48_v22 = vld [vmem:[%s1410_s1 + $0x38] sm:$0xff]  ;;  %v33_v23 = vld [vmem:[%s1409_s0 + $0x40] sm:$0xff] }
   0x7   :  { %v1094_v20 = vmul.f32 %v1087_v18, %v1082_v17  ;;  %325 = vrot.lane.b32.xlu0 %v25_v4, %s994_s25  ;;  %v1106_v24 = vmul.f32 %v48_v22, %v32_v21  ;;  %v49_v25 = vld [vmem:[%s1410_s1 + $0x40] sm:$0xff]  ;;  %v34_v26 = vld [vmem:[%s1409_s0 + $0x48] sm:$0xff]  ;;  %v35_v30 = vld [vmem:[%s1409_s0 + $0x50] sm:$0xff] }
   0x8   :  { %v50_v27 = vld [vmem:[%s1410_s1 + $0x48] sm:$0xff]  ;;  %v1117_v28 = vmul.f32 %v49_v25, %v33_v23  ;;  %v51_v31 = vld [vmem:[%s1410_s1 + $0x50] sm:$0xff]  ;;  %v36_v32 = vld [vmem:[%s1409_s0 + $0x58] sm:$0xff] }
   0x9   :  { %v1119_v29 = vmul.f32 %v50_v27, %v34_v26  ;;  %v1130_v33 = vmul.f32 %v51_v31, %v35_v30  ;;  %v52_v34 = vld [vmem:[%s1410_s1 + $0x58] sm:$0xff]  ;;  %v37_v35 = vld [vmem:[%s1409_s0 + $0x60] sm:$0xff]  ;;  %v38_v39 = vld [vmem:[%s1409_s0 + $0x68] sm:$0xff] }
   0xa   :  { %v53_v36 = vld [vmem:[%s1410_s1 + $0x60] sm:$0xff]  ;;  %329 = vrot.lane.b32.xlu1 %v27_v5, %s994_s25  ;;  %v1142_v37 = vmul.f32 %v52_v34, %v36_v32  ;;  %v54_v40 = vld [vmem:[%s1410_s1 + $0x68] sm:$0xff]  ;;  %v39_v41 = vld [vmem:[%s1409_s0 + $0x70] sm:$0xff] }
   0xb   :  { %v1144_v38 = vmul.f32 %v53_v36, %v37_v35  ;;  %103 = vrot.lane.b32.xlu0 %v43_v7, %s994_s25  ;;  %v1156_v42 = vmul.f32 %v54_v40, %v38_v39  ;;  %v55_v43 = vld [vmem:[%s1410_s1 + $0x70] sm:$0xff]  ;;  %v40_v44 = vld [vmem:[%s1409_s0 + $0x78] sm:$0xff]  ;;  %v62_v51 = vld [vmem:[%s1412_s3 + $0x8] sm:$0xff] }
   0xc   :  { %v56_v45 = vld [vmem:[%s1410_s1 + $0x78] sm:$0xff]  ;;  %v1167_v46 = vmul.f32 %v55_v43, %v39_v41  ;;  %v63_v49 = vld [vmem:[%s1412_s3 + $0x10] sm:$0xff] }
   0xd   :  { %v1169_v47 = vmul.f32 %v56_v45, %v40_v44  ;;  %v64_v48 = vld [vmem:[%s1412_s3 + $0x18] sm:$0xff] }
   0xe   :  { %906 = vmatprep.subr.mxu0 %v64_v48  ;;  %v60_v50 = vld [vmem:[%s1411_s2 + $0x18] sm:$0xff]  ;;  %331 = vrot.lane.b32.xlu1 %v28_v8, %s994_s25 }
   0xf   :  { %907 = vmatpush3.msra.mxu0 %v64_v48 }
  0x10   :  { %12 = vsyncpa [#allocation4], 0  ;;  %105 = vrot.lane.b32.xlu0 %v44_v9, %s994_s25  ;;  %908 = vmatprep.subr.mxu0 %v63_v49  ;;  %v61_v52 = vld [vmem:[%s1412_s3] sm:$0xff]  ;;  %v59_v53 = vld [vmem:[%s1411_s2 + $0x10] sm:$0xff]  ;;  %vm131_vm0 = vcmask 261120   ;;  %vm718_vm1 = vcmask 130112  }
  0x11   :  { %909 = vmatpush3.msra.mxu0 %v63_v49  ;;  %938 = vmatprep.subr.mxu1 %v60_v50  ;;  %v58_v54 = vld [vmem:[%s1411_s2 + $0x8] sm:$0xff]  ;;  %v57_v55 = vld [vmem:[%s1411_s2] sm:$0xff]  ;;  %vm725_vm2 = vcmask 195712   ;;  %vm732_vm3 = vcmask 261312   ;;  %vm739_vm4 = vcmask 326912   ;;  %vm746_vm5 = vcmask 392512  }
  0x12   :  { %910 = vmatprep.subr.mxu0 %v62_v51  ;;  %939 = vmatpush3.msra.mxu1 %v60_v50  ;;  %vm753_vm6 = vcmask 458112   ;;  %vm760_vm7 = vcmask 523712   ;;  %vm767_vm8 = vcmask 589312   ;;  %vm774_vm9 = vcmask 654912  }
  0x13   :  { %333 = vrot.lane.b32.xlu1 %v29_v12, %s994_s25  ;;  %911 = vmatpush3.msra.mxu0 %v62_v51  ;;  %vm781_vm10 = vcmask 720512   ;;  %vm788_vm11 = vcmask 786112   ;;  %vm795_vm12 = vcmask 851712   ;;  %vm802_vm13 = vcmask 917312  }
  0x14   :  { %107 = vrot.lane.b32.xlu0 %v45_v13, %s994_s25  ;;  %912 = vmatprep.subr.mxu0 %v61_v52  ;;  %vm809_vm14 = vcmask 982912   ;;  %vm816_vm15 = vcmask 1048512  }
  0x15   :  { %940 = vmatprep.subr.mxu1 %v59_v53  ;;  %913 = vmatpush3.msra.mxu0 %v61_v52 }
  0x16   :  { %941 = vmatpush3.msra.mxu1 %v59_v53 }
  0x17   :  { %335 = vrot.lane.b32.xlu1 %v30_v14, %s994_s25  ;;  %942 = vmatprep.subr.mxu1 %v58_v54 }
  0x18   :  { %109 = vrot.lane.b32.xlu0 %v46_v16, %s994_s25  ;;  %943 = vmatpush3.msra.mxu1 %v58_v54 }
  0x19   :  { %944 = vmatprep.subr.mxu1 %v57_v55 }
  0x1a   :  { %945 = vmatpush3.msra.mxu1 %v57_v55 }
  0x1b   :  { %337 = vrot.lane.b32.xlu1 %v1082_v17, %s994_s25 }
  0x1c   :  { %111 = vrot.lane.b32.xlu0 %v1087_v18, %s994_s25 }
  0x1f   :  { %339 = vrot.lane.b32.xlu1 %v32_v21, %s994_s25 }
  0x20   :  { %113 = vrot.lane.b32.xlu0 %v48_v22, %s994_s25 }
  0x23   :  { %341 = vrot.lane.b32.xlu1 %v33_v23, %s994_s25 }
  0x24   :  { %115 = vrot.lane.b32.xlu0 %v49_v25, %s994_s25 }
  0x27   :  { %343 = vrot.lane.b32.xlu1 %v34_v26, %s994_s25 }
  0x28   :  { %117 = vrot.lane.b32.xlu0 %v50_v27, %s994_s25 }
  0x2b   :  { %345 = vrot.lane.b32.xlu1 %v35_v30, %s994_s25 }
  0x2c   :  { %119 = vrot.lane.b32.xlu0 %v51_v31, %s994_s25 }
  0x2f   :  { %347 = vrot.lane.b32.xlu1 %v36_v32, %s994_s25 }
  0x30   :  { %121 = vrot.lane.b32.xlu0 %v52_v34, %s994_s25 }
  0x33   :  { %349 = vrot.lane.b32.xlu1 %v37_v35, %s994_s25  ;;  %v534_v35 = vlaneseq }
  0x34   :  { %123 = vrot.lane.b32.xlu0 %v53_v36, %s994_s25 }
  0x35   :  { %v1256_v36 = vshrl.u32 %v534_v35, 7 }
  0x37   :  { %351 = vrot.lane.b32.xlu1 %v38_v39, %s994_s25  ;;  %v536_v39 = vsub.s32 0, %v1256_v36 }
  0x38   :  { %125 = vrot.lane.b32.xlu0 %v54_v40, %s994_s25  ;;  %v65_v40 = vld [vmem:[%s1413_s4] sm:$0xff] }
  0x3b   :  { %353 = vrot.lane.b32.xlu1 %v39_v41, %s994_s25  ;;  %v572_v41 = vsub.s32 1, %v1256_v36 }
  0x3c   :  { %127 = vrot.lane.b32.xlu0 %v55_v43, %s994_s25 }
  0x3d   :  { %v1266_v49 = vrot.slane %v65_v40, %v572_v41 }
  0x3f   :  { %355 = vrot.lane.b32.xlu1 %v40_v44, %s994_s25  ;;  %v1263_v44 = vrot.slane %v65_v40, %v536_v39 }
  0x40   :  { %129 = vrot.lane.b32.xlu0 %v56_v45, %s994_s25  ;;  %v592_v45 = vsub.s32 2, %v1256_v36 }
  0x42   :  { %v1269_v55 = vrot.slane %v65_v40, %v592_v45 }
  0x74   :  { %v102_v56 = vpop.permute.xlu1 %101  ;;  %v100_v57 = vpop.permute.xlu0 %99 }
  0x75   :  { %914 = vmatprep.mubr.msk.f32.mxu0 %vm131_vm0, %v100_v57 }
  0x76   :  { %915 = vmatmul.mubr.msk.f32.vlgmr.msra.gmra.mxu0 %vm131_vm0, %v102_v56  ;;  %v575_v56 = vmul.f32 %v1266_v49, %v1038_v2 }
  0x78   :  { %v328_v58 = vpop.permute.xlu1 %327 }
  0x79   :  { %v326_v59 = vpop.permute.xlu0 %325 }
  0x7a   :  { %946 = vmatprep.mubr.msk.f32.mxu1 %vm131_vm0, %v326_v59 }
  0x7b   :  { %947 = vmatmul.mubr.msk.f32.vlgmr.msra.gmra.mxu1 %vm131_vm0, %v328_v58 }
  0x7c   :  { %v330_v60 = vpop.permute.xlu1 %329 }
  0x7d   :  { %v104_v61 = vpop.permute.xlu0 %103  ;;  %949 = vmatprep.mubr.msk.f32.mxu1 %vm131_vm0, %v330_v60  ;;  %v574_v60 = vmul.f32 %v1266_v49, %v1050_v6  ;;  %v577_v6 = vmul.f32 %v1266_v49, %v1063_v11 }
  0x7e   :  { %917 = vmatprep.mubr.msk.f32.mxu0 %vm131_vm0, %v104_v61 }
  0x80   :  { %v332_v62 = vpop.permute.xlu1 %331 }
  0x81   :  { %950 = vmatmul.mubr.msk.f32.gmra.mxu1 %vm131_vm0, %v332_v62 }
  0x82   :  { %v106_v63 = vpop.permute.xlu0 %105 }
  0x83   :  { %918 = vmatmul.mubr.msk.f32.gmra.mxu0 %vm131_vm0, %v106_v63 }
  0x85   :  { %v334_v0 = vpop.permute.xlu1 %333 }
  0x86   :  { %v108_v1 = vpop.permute.xlu0 %107  ;;  %952 = vmatprep.mubr.msk.f32.mxu1 %vm131_vm0, %v334_v0 }
  0x87   :  { %920 = vmatprep.mubr.msk.f32.mxu0 %vm131_vm0, %v108_v1 }
  0x89   :  { %v336_v3 = vpop.permute.xlu1 %335 }
  0x8a   :  { %v110_v4 = vpop.permute.xlu0 %109  ;;  %953 = vmatmul.mubr.msk.f32.gmra.mxu1 %vm131_vm0, %v336_v3 }
  0x8b   :  { %921 = vmatmul.mubr.msk.f32.gmra.mxu0 %vm131_vm0, %v110_v4 }
  0x8d   :  { %v338_v5 = vpop.permute.xlu1 %337 }
  0x8e   :  { %v112_v7 = vpop.permute.xlu0 %111  ;;  %955 = vmatprep.mubr.msk.f32.mxu1 %vm131_vm0, %v338_v5 }
  0x8f   :  { %923 = vmatprep.mubr.msk.f32.mxu0 %vm131_vm0, %v112_v7 }
  0x91   :  { %v340_v8 = vpop.permute.xlu1 %339 }
  0x92   :  { %v114_v9 = vpop.permute.xlu0 %113  ;;  %956 = vmatmul.mubr.msk.f32.gmra.mxu1 %vm131_vm0, %v340_v8 }
  0x93   :  { %924 = vmatmul.mubr.msk.f32.gmra.mxu0 %vm131_vm0, %v114_v9 }
  0x95   :  { %v342_v12 = vpop.permute.xlu1 %341 }
  0x96   :  { %v116_v13 = vpop.permute.xlu0 %115  ;;  %958 = vmatprep.mubr.msk.f32.mxu1 %vm131_vm0, %v342_v12 }
  0x97   :  { %926 = vmatprep.mubr.msk.f32.mxu0 %vm131_vm0, %v116_v13 }
  0x99   :  { %v344_v14 = vpop.permute.xlu1 %343 }
  0x9a   :  { %v118_v16 = vpop.permute.xlu0 %117  ;;  %959 = vmatmul.mubr.msk.f32.gmra.mxu1 %vm131_vm0, %v344_v14 }
  0x9b   :  { %927 = vmatmul.mubr.msk.f32.gmra.mxu0 %vm131_vm0, %v118_v16 }
  0x9d   :  { %v346_v17 = vpop.permute.xlu1 %345 }
  0x9e   :  { %v120_v18 = vpop.permute.xlu0 %119  ;;  %961 = vmatprep.mubr.msk.f32.mxu1 %vm131_vm0, %v346_v17 }
  0x9f   :  { %929 = vmatprep.mubr.msk.f32.mxu0 %vm131_vm0, %v120_v18 }
  0xa1   :  { %v348_v21 = vpop.permute.xlu1 %347 }
  0xa2   :  { %v122_v22 = vpop.permute.xlu0 %121  ;;  %962 = vmatmul.mubr.msk.f32.gmra.mxu1 %vm131_vm0, %v348_v21  ;;  %v576_v21 = vmul.f32 %v1266_v49, %v1061_v10  ;;  %v579_v10 = vmul.f32 %v1266_v49, %v1090_v19 }
  0xa3   :  { %930 = vmatmul.mubr.msk.f32.gmra.mxu0 %vm131_vm0, %v122_v22 }
  0xa5   :  { %v350_v23 = vpop.permute.xlu1 %349 }
  0xa6   :  { %v124_v25 = vpop.permute.xlu0 %123  ;;  %964 = vmatprep.mubr.msk.f32.mxu1 %vm131_vm0, %v350_v23 }
  0xa7   :  { %932 = vmatprep.mubr.msk.f32.mxu0 %vm131_vm0, %v124_v25 }
  0xa9   :  { %v352_v26 = vpop.permute.xlu1 %351 }
  0xaa   :  { %v126_v27 = vpop.permute.xlu0 %125  ;;  %965 = vmatmul.mubr.msk.f32.gmra.mxu1 %vm131_vm0, %v352_v26 }
  0xab   :  { %933 = vmatmul.mubr.msk.f32.gmra.mxu0 %vm131_vm0, %v126_v27 }
  0xad   :  { %v354_v30 = vpop.permute.xlu1 %353 }
  0xae   :  { %v128_v31 = vpop.permute.xlu0 %127  ;;  %967 = vmatprep.mubr.msk.f32.mxu1 %vm131_vm0, %v354_v30 }
  0xaf   :  { %935 = vmatprep.mubr.msk.f32.mxu0 %vm131_vm0, %v128_v31 }
  0xb1   :  { %v356_v32 = vpop.permute.xlu1 %355 }
  0xb2   :  { %v130_v34 = vpop.permute.xlu0 %129  ;;  %968 = vmatmul.mubr.msk.f32.gmra.mxu1 %vm131_vm0, %v356_v32 }
  0xb3   :  { %936 = vmatmul.mubr.msk.f32.gmra.mxu0 %vm131_vm0, %v130_v34 }
 0x136   :  { %v916_v43 = vpop.f32.mrf.mxu0 }
 0x138   :  { %v230_v51 = vpop.f32.mrf.mxu0 }
 0x13b   :  { %v948_v48 = vpop.f32.mrf.mxu1 }
 0x13c   :  { %v461_v50 = vadd.f32 %v948_v48, %v916_v43 }
 0x13d   :  { %v455_v52 = vpop.f32.mrf.mxu1 }
 0x13e   :  { %v539_v53 = vadd.f32 %v1263_v44, %v461_v50  ;;  %v456_v54 = vadd.f32 %v455_v52, %v230_v51  ;;  %v578_v50 = vmul.f32 %v1266_v49, %v1074_v15 }
 0x140   :  { %v555_v57 = vmax.f32 %v539_v53, 0.0  ;;  %v538_v58 = vadd.f32 %v1263_v44, %v456_v54 }
 0x141   :  { %v951_v59 = vpop.f32.mrf.mxu1 }
 0x142   :  { %v554_v61 = vmax.f32 %v538_v58, 0.0  ;;  %v595_v63 = vmul.f32 %v1269_v55, %v555_v57 }
 0x143   :  { %v919_v62 = vpop.f32.mrf.mxu0  ;;  %v465_v1 = vpop.f32.mrf.mxu1 }
 0x144   :  { %v471_v0 = vadd.f32 %v951_v59, %v919_v62  ;;  %v611_v4 = vadd.f32 %v595_v63, %v575_v56  ;;  %v594_v5 = vmul.f32 %v1269_v55, %v554_v61  ;;  %v581_v63 = vmul.f32 %v1266_v49, %v1106_v24 }
 0x145   :  { %v240_v3 = vpop.f32.mrf.mxu0 }
 0x146   :  { %v541_v7 = vadd.f32 %v1263_v44, %v471_v0  ;;  %v466_v2 = vadd.f32 %v465_v1, %v240_v3  ;;  %v629_v8 = vsel %vm131_vm0, %v611_v4, 0.0  ;;  %v610_v9 = vadd.f32 %v594_v5, %v574_v60 }
 0x147   :  { %630 = vadd.xlane.f32.xlu1 %v629_v8  ;;  %v580_v4 = vmul.f32 %v1266_v49, %v1094_v20  ;;  %v583_v20 = vmul.f32 %v1266_v49, %v1119_v29 }
 0x148   :  { %v557_v12 = vmax.f32 %v541_v7, 0.0  ;;  %v540_v13 = vadd.f32 %v1263_v44, %v466_v2  ;;  %v626_v14 = vsel %vm131_vm0, %v610_v9, 0.0 }
 0x149   :  { %627 = vadd.xlane.f32.xlu0 %v626_v14 }
 0x14a   :  { %v556_v16 = vmax.f32 %v540_v13, 0.0  ;;  %v954_v17 = vpop.f32.mrf.mxu1  ;;  %v597_v18 = vmul.f32 %v1269_v55, %v557_v12 }
 0x14b   :  { %v922_v22 = vpop.f32.mrf.mxu0 }
 0x14c   :  { %v481_v23 = vadd.f32 %v954_v17, %v922_v22  ;;  %v475_v25 = vpop.f32.mrf.mxu1  ;;  %v613_v26 = vadd.f32 %v597_v18, %v577_v6  ;;  %v596_v27 = vmul.f32 %v1269_v55, %v556_v16 }
 0x14d   :  { %v250_v30 = vpop.f32.mrf.mxu0 }
 0x14e   :  { %v543_v31 = vadd.f32 %v1263_v44, %v481_v23  ;;  %v476_v11 = vadd.f32 %v475_v25, %v250_v30  ;;  %v635_v32 = vsel %vm131_vm0, %v613_v26, 0.0  ;;  %v612_v34 = vadd.f32 %v596_v27, %v576_v21 }
 0x14f   :  { %636 = vadd.xlane.f32.xlu0 %v635_v32  ;;  %v582_v25 = vmul.f32 %v1266_v49, %v1117_v28  ;;  %v585_v28 = vmul.f32 %v1266_v49, %v1142_v37 }
 0x150   :  { %v559_v39 = vmax.f32 %v543_v31, 0.0  ;;  %v542_v40 = vadd.f32 %v1263_v44, %v476_v11  ;;  %v632_v45 = vsel %vm131_vm0, %v612_v34, 0.0 }
 0x152   :  { %v558_v41 = vmax.f32 %v542_v40, 0.0  ;;  %v957_v43 = vpop.f32.mrf.mxu1  ;;  %v599_v48 = vmul.f32 %v1269_v55, %v559_v39 }
 0x153   :  { %v925_v51 = vpop.f32.mrf.mxu0  ;;  %633 = vadd.xlane.f32.xlu0 %v632_v45 }
 0x154   :  { %v491_v52 = vadd.f32 %v957_v43, %v925_v51  ;;  %v485_v53 = vpop.f32.mrf.mxu1  ;;  %v615_v54 = vadd.f32 %v599_v48, %v579_v10  ;;  %v598_v56 = vmul.f32 %v1269_v55, %v558_v41  ;;  %v584_v51 = vmul.f32 %v1266_v49, %v1130_v33 }
 0x155   :  { %v260_v57 = vpop.f32.mrf.mxu0  ;;  %v587_v33 = vmul.f32 %v1266_v49, %v1156_v42 }
 0x156   :  { %v545_v58 = vadd.f32 %v1263_v44, %v491_v52  ;;  %v486_v19 = vadd.f32 %v485_v53, %v260_v57  ;;  %v641_v59 = vsel %vm131_vm0, %v615_v54, 0.0  ;;  %v614_v60 = vadd.f32 %v598_v56, %v578_v50 }
 0x157   :  { %642 = vadd.xlane.f32.xlu0 %v641_v59 }
 0x158   :  { %v561_v61 = vmax.f32 %v545_v58, 0.0  ;;  %v544_v62 = vadd.f32 %v1263_v44, %v486_v19  ;;  %v638_v15 = vsel %vm131_vm0, %v614_v60, 0.0 }
 0x159   :  { %639 = vadd.xlane.f32.xlu1 %v638_v15 }
 0x15a   :  { %v560_v0 = vmax.f32 %v544_v62, 0.0  ;;  %v960_v1 = vpop.f32.mrf.mxu1  ;;  %v601_v3 = vmul.f32 %v1269_v55, %v561_v61 }
 0x15b   :  { %v928_v5 = vpop.f32.mrf.mxu0 }
 0x15c   :  { %v501_v7 = vadd.f32 %v960_v1, %v928_v5  ;;  %v495_v2 = vpop.f32.mrf.mxu1  ;;  %v617_v8 = vadd.f32 %v601_v3, %v581_v63  ;;  %v600_v9 = vmul.f32 %v1269_v55, %v560_v0  ;;  %v586_v3 = vmul.f32 %v1266_v49, %v1144_v38 }
 0x15d   :  { %v270_v12 = vpop.f32.mrf.mxu0  ;;  %v589_v38 = vmul.f32 %v1266_v49, %v1169_v47  ;;  %v1351_v47 = vand.u32 127, %v534_v35 }
 0x15e   :  { %v547_v13 = vadd.f32 %v1263_v44, %v501_v7  ;;  %v496_v6 = vadd.f32 %v495_v2, %v270_v12  ;;  %v647_v24 = vsel %vm131_vm0, %v617_v8, 0.0  ;;  %v616_v14 = vadd.f32 %v600_v9, %v580_v4 }
 0x15f   :  { %648 = vadd.xlane.f32.xlu0 %v647_v24 }
 0x160   :  { %v563_v16 = vmax.f32 %v547_v13, 0.0  ;;  %v546_v17 = vadd.f32 %v1263_v44, %v496_v6  ;;  %v644_v18 = vsel %vm131_vm0, %v616_v14, 0.0 }
 0x161   :  { %645 = vadd.xlane.f32.xlu1 %v644_v18 }
 0x162   :  { %v562_v21 = vmax.f32 %v546_v17, 0.0  ;;  %v963_v22 = vpop.f32.mrf.mxu1  ;;  %v603_v23 = vmul.f32 %v1269_v55, %v563_v16 }
 0x163   :  { %v931_v26 = vpop.f32.mrf.mxu0 }
 0x164   :  { %v511_v27 = vadd.f32 %v963_v22, %v931_v26  ;;  %v505_v30 = vpop.f32.mrf.mxu1  ;;  %v619_v31 = vadd.f32 %v603_v23, %v583_v20  ;;  %v602_v11 = vmul.f32 %v1269_v55, %v562_v21  ;;  %v588_v20 = vmul.f32 %v1266_v49, %v1167_v46 }
 0x165   :  { %v280_v32 = vpop.f32.mrf.mxu0 }
 0x166   :  { %v549_v34 = vadd.f32 %v1263_v44, %v511_v27  ;;  %v506_v39 = vadd.f32 %v505_v30, %v280_v32  ;;  %v653_v29 = vsel %vm131_vm0, %v619_v31, 0.0  ;;  %v618_v40 = vadd.f32 %v602_v11, %v582_v25 }
 0x167   :  { %654 = vadd.xlane.f32.xlu0 %v653_v29  ;;  %v720_v30 = vadd.s32 4294967280, %v1351_v47  ;;  %v713_v31 = vadd.s32 4294967288, %v1351_v47  ;;  %v711_v11 = vsub.s32 %v1351_v47, %v1256_v36  ;;  %v734_v29 = vadd.s32 4294967264, %v1351_v47 }
 0x168   :  { %v565_v10 = vmax.f32 %v549_v34, 0.0  ;;  %v548_v41 = vadd.f32 %v1263_v44, %v506_v39  ;;  %v650_v43 = vsel %vm131_vm0, %v618_v40, 0.0  ;;  %v727_v34 = vadd.s32 4294967272, %v1351_v47 }
 0x169   :  { %651 = vadd.xlane.f32.xlu1 %v650_v43  ;;  %v723_v35 = vsub.s32 %v720_v30, %v1256_v36  ;;  %v716_v40 = vsub.s32 %v713_v31, %v1256_v36 }
 0x16a   :  { %v564_v45 = vmax.f32 %v548_v41, 0.0  ;;  %v966_v48 = vpop.f32.mrf.mxu1  ;;  %v605_v50 = vmul.f32 %v1269_v55, %v565_v10 }
 0x16b   :  { %v934_v52 = vpop.f32.mrf.mxu0 }
 0x16c   :  { %v521_v53 = vadd.f32 %v966_v48, %v934_v52  ;;  %v515_v54 = vpop.f32.mrf.mxu1  ;;  %v621_v56 = vadd.f32 %v605_v50, %v585_v28  ;;  %v604_v57 = vmul.f32 %v1269_v55, %v564_v45  ;;  %v748_v28 = vadd.s32 4294967248, %v1351_v47 }
 0x16d   :  { %v290_v58 = vpop.f32.mrf.mxu0  ;;  %v730_v45 = vsub.s32 %v727_v34, %v1256_v36  ;;  %v737_v50 = vsub.s32 %v734_v29, %v1256_v36  ;;  %v804_v29 = vadd.s32 4294967184, %v1351_v47 }
 0x16e   :  { %v551_v19 = vadd.f32 %v1263_v44, %v521_v53  ;;  %v516_v59 = vadd.f32 %v515_v54, %v290_v58  ;;  %v659_v37 = vsel %vm131_vm0, %v621_v56, 0.0  ;;  %v620_v60 = vadd.f32 %v604_v57, %v584_v51 }
 0x16f   :  { %660 = vadd.xlane.f32.xlu0 %v659_v37  ;;  %v741_v54 = vadd.s32 4294967256, %v1351_v47 }
 0x170   :  { %v567_v61 = vmax.f32 %v551_v19, 0.0  ;;  %v550_v62 = vadd.f32 %v1263_v44, %v516_v59  ;;  %v656_v15 = vsel %vm131_vm0, %v620_v60, 0.0  ;;  %v755_v19 = vadd.s32 4294967240, %v1351_v47 }
 0x171   :  { %657 = vadd.xlane.f32.xlu1 %v656_v15  ;;  %v751_v59 = vsub.s32 %v748_v28, %v1256_v36 }
 0x172   :  { %v566_v63 = vmax.f32 %v550_v62, 0.0  ;;  %v969_v0 = vpop.f32.mrf.mxu1  ;;  %v607_v1 = vmul.f32 %v1269_v55, %v567_v61  ;;  %v762_v62 = vadd.s32 4294967232, %v1351_v47 }
 0x173   :  { %v937_v4 = vpop.f32.mrf.mxu0 }
 0x174   :  { %v531_v5 = vadd.f32 %v969_v0, %v937_v4  ;;  %v525_v7 = vpop.f32.mrf.mxu1  ;;  %v623_v2 = vadd.f32 %v607_v1, %v587_v33  ;;  %v606_v8 = vmul.f32 %v1269_v55, %v566_v63  ;;  %v744_v33 = vsub.s32 %v741_v54, %v1256_v36 }
 0x175   :  { %v300_v9 = vpop.f32.mrf.mxu0  ;;  %v758_v4 = vsub.s32 %v755_v19, %v1256_v36 }
 0x176   :  { %v553_v12 = vadd.f32 %v1263_v44, %v531_v5  ;;  %v526_v13 = vadd.f32 %v525_v7, %v300_v9  ;;  %v665_v42 = vsel %vm131_vm0, %v623_v2, 0.0  ;;  %v622_v6 = vadd.f32 %v606_v8, %v586_v3 }
 0x177   :  { %666 = vadd.xlane.f32.xlu0 %v665_v42  ;;  %v776_v5 = vadd.s32 4294967216, %v1351_v47  ;;  %v765_v8 = vsub.s32 %v762_v62, %v1256_v36  ;;  %v769_v42 = vadd.s32 4294967224, %v1351_v47 }
 0x178   :  { %v569_v24 = vmax.f32 %v553_v12, 0.0  ;;  %v552_v14 = vadd.f32 %v1263_v44, %v526_v13  ;;  %v662_v16 = vsel %vm131_vm0, %v622_v6, 0.0 }
 0x179   :  { %663 = vadd.xlane.f32.xlu1 %v662_v16  ;;  %v783_v16 = vadd.s32 4294967208, %v1351_v47 }
 0x17a   :  { %v568_v17 = vmax.f32 %v552_v14, 0.0  ;;  %v609_v18 = vmul.f32 %v1269_v55, %v569_v24 }
 0x17c   :  { %v625_v21 = vadd.f32 %v609_v18, %v589_v38  ;;  %v608_v22 = vmul.f32 %v1269_v55, %v568_v17  ;;  %v1358_v55 = vstv %s1414_s5  ;;  %v779_v38 = vsub.s32 %v776_v5, %v1256_v36  ;;  %s995_s5 = smov [#allocation3]  }
 0x17d   :  { %s826_s7 = sshll.u32 %s995_s5, 4  ;;  %s827_s7 = int_to_ptr.vmem [resolvable:$true] %s826_s7 }
 0x17e   :  { %v671_v23 = vsel %vm131_vm0, %v625_v21, 0.0  ;;  %v624_v25 = vadd.f32 %v608_v22, %v588_v20  ;;  %v790_v21 = vadd.s32 4294967200, %v1351_v47  ;;  %s972_s8 = scalar_lea.vmem %s827_s7, 16  ;;  %s976_s9 = scalar_lea.vmem %s827_s7, 32 }
 0x17f   :  { %672 = vadd.xlane.f32.xlu0 %v671_v23  ;;  %v772_v23 = vsub.s32 %v769_v42, %v1256_v36  ;;  %p973_p0 = scmp.ne.s32.totalorder %s827_s7, %s972_s8  ;;  %p977_p1 = scmp.lt.s32.totalorder %s827_s7, %s827_s7 }
 0x180   :  { %v668_v44 = vsel %vm131_vm0, %v624_v25, 0.0  ;;  %p978_p2 = scmp.lt.s32.totalorder %s976_s9, %s972_s8 }
 0x181   :  { %669 = vadd.xlane.f32.xlu1 %v668_v44 }
 0x182   :  { %p979_p3 = por %p978_p2, %p977_p1 }
 0x184   :  { %p980_p4 = pnand %p979_p3, %p973_p0 }
 0x1d0   :  { %v631_v46 = vpop.xlane.xlu1 %630 }
 0x1d1   :  { %v676_v10 = vadd.f32 %v1358_v55, %v631_v46 }
 0x1d2   :  { %v628_v26 = vpop.xlane.xlu0 %627 }
 0x1d3   :  { %v675_v32 = vadd.f32 %v1358_v55, %v628_v26  ;;  %v717_v52 = vrot.slane %v676_v10, %v716_v40  ;;  %v811_v10 = vadd.s32 4294967176, %v1351_v47 }
 0x1d5   :  { %v712_v43 = vrot.slane %v675_v32, %v711_v11 }
 0x1d7   :  { %v719_v58 = vsel %vm718_vm1, %v717_v52, %v712_v43 }
 0x1d8   :  { %v637_v27 = vpop.xlane.xlu0 %636 }
 0x1d9   :  { %v678_v53 = vadd.f32 %v1358_v55, %v637_v27  ;;  %v786_v27 = vsub.s32 %v783_v16, %v1256_v36 }
 0x1db   :  { %v731_v15 = vrot.slane %v678_v53, %v730_v45  ;;  %v814_v53 = vsub.s32 %v811_v10, %v1256_v36 }
 0x1dc   :  { %v634_v49 = vpop.xlane.xlu0 %633 }
 0x1dd   :  { %v677_v39 = vadd.f32 %v1358_v55, %v634_v49  ;;  %v793_v49 = vsub.s32 %v790_v21, %v1256_v36 }
 0x1df   :  { %v724_v48 = vrot.slane %v677_v39, %v723_v35  ;;  %v797_v35 = vadd.s32 4294967192, %v1351_v47 }
 0x1e0   :  { %v643_v56 = vpop.xlane.xlu0 %642 }
 0x1e1   :  { %v726_v37 = vsel %vm725_vm2, %v724_v48, %v719_v58  ;;  %v680_v63 = vadd.f32 %v1358_v55, %v643_v56  ;;  %v800_v45 = vsub.s32 %v797_v35, %v1256_v36 }
 0x1e2   :  { %v640_v41 = vpop.xlane.xlu1 %639  ;;  %v733_v3 = vsel %vm732_vm3, %v731_v15, %v726_v37 }
 0x1e3   :  { %v679_v51 = vadd.f32 %v1358_v55, %v640_v41  ;;  %v745_v12 = vrot.slane %v680_v63, %v744_v33 }
 0x1e5   :  { %v738_v60 = vrot.slane %v679_v51, %v737_v50  ;;  %v807_v51 = vsub.s32 %v804_v29, %v1256_v36 }
 0x1e7   :  { %v740_v7 = vsel %vm739_vm4, %v738_v60, %v733_v3 }
 0x1e8   :  { %v649_v0 = vpop.xlane.xlu0 %648  ;;  %v747_v14 = vsel %vm746_vm5, %v745_v12, %v740_v7 }
 0x1e9   :  { %v682_v13 = vadd.f32 %v1358_v55, %v649_v0 }
 0x1ea   :  { %v646_v57 = vpop.xlane.xlu1 %645 }
 0x1eb   :  { %v681_v61 = vadd.f32 %v1358_v55, %v646_v57  ;;  %v759_v22 = vrot.slane %v682_v13, %v758_v4 }
 0x1ed   :  { %v752_v2 = vrot.slane %v681_v61, %v751_v59 }
 0x1ef   :  { %v754_v17 = vsel %vm753_vm6, %v752_v2, %v747_v14 }
 0x1f0   :  { %v655_v6 = vpop.xlane.xlu0 %654  ;;  %v761_v26 = vsel %vm760_vm7, %v759_v22, %v754_v17 }
 0x1f1   :  { %v684_v25 = vadd.f32 %v1358_v55, %v655_v6 }
 0x1f2   :  { %v652_v1 = vpop.xlane.xlu1 %651 }
 0x1f3   :  { %v683_v9 = vadd.f32 %v1358_v55, %v652_v1  ;;  %v773_v32 = vrot.slane %v684_v25, %v772_v23 }
 0x1f5   :  { %v766_v18 = vrot.slane %v683_v9, %v765_v8 }
 0x1f7   :  { %v768_v31 = vsel %vm767_vm8, %v766_v18, %v761_v26 }
 0x1f8   :  { %v661_v44 = vpop.xlane.xlu0 %660  ;;  %v775_v40 = vsel %vm774_vm9, %v773_v32, %v768_v31 }
 0x1f9   :  { %v686_v34 = vadd.f32 %v1358_v55, %v661_v44 }
 0x1fa   :  { %v658_v24 = vpop.xlane.xlu1 %657 }
 0x1fb   :  { %v685_v20 = vadd.f32 %v1358_v55, %v658_v24  ;;  %v787_v28 = vrot.slane %v686_v34, %v786_v27 }
 0x1fd   :  { %v780_v46 = vrot.slane %v685_v20, %v779_v38 }
 0x1ff   :  { %v782_v41 = vsel %vm781_vm10, %v780_v46, %v775_v40 }
 0x200   :  { %v667_v39 = vpop.xlane.xlu0 %666  ;;  %v789_v52 = vsel %vm788_vm11, %v787_v28, %v782_v41 }
 0x201   :  { %v688_v48 = vadd.f32 %v1358_v55, %v667_v39 }
 0x202   :  { %v664_v30 = vpop.xlane.xlu1 %663 }
 0x203   :  { %v687_v11 = vadd.f32 %v1358_v55, %v664_v30  ;;  %v801_v58 = vrot.slane %v688_v48, %v800_v45 }
 0x205   :  { %v794_v43 = vrot.slane %v687_v11, %v793_v49 }
 0x207   :  { %v796_v57 = vsel %vm795_vm12, %v794_v43, %v789_v52 }
 0x208   :  { %v673_v50 = vpop.xlane.xlu0 %672  ;;  %v803_v37 = vsel %vm802_vm13, %v801_v58, %v796_v57 }
 0x209   :  { %v690_v54 = vadd.f32 %v1358_v55, %v673_v50 }
 0x20a   :  { %v670_v56 = vpop.xlane.xlu1 %669 }
 0x20b   :  { %v689_v47 = vadd.f32 %v1358_v55, %v670_v56  ;;  %v815_v59 = vrot.slane %v690_v54, %v814_v53 }
 0x20d   :  { %v808_v19 = vrot.slane %v689_v47, %v807_v51 }
 0x20f   :  { %v810_v60 = vsel %vm809_vm14, %v808_v19, %v803_v37 }
 0x210   :  { %v817_v61 = vsel %vm816_vm15, %v815_v59, %v810_v60 }
 0x211   :  { %819 = vst [vmem:[#allocation3] sm:$0x1] %v817_v61 }
 0x212   :  { %983 = shalt.err (!%p980_p4)
}
 0x213   :  { %829 = dma.vmem_to_hbm [thread:$0]  %s827_s7, 16, %s1415_s6, [#allocation4]  }
 0x214   :  { %992 = dma.done.wait [#allocation4], 16  }
 0x215   :  { %993 = vsyncadd [#allocation4], 4294967280 }
 0x216   :  { %833 = vsyncpa [#allocation4], 1 }

</bundles_post_ra>
